<compile_context>
chip_gen: v6e
topology: v6e:2x2x1
jax: 0.10.0
libtpu: 0.0.40
codegen_flags: <defaults>
</compile_context>

<pallas_src>
import jax
import jax.numpy as jnp
from jax import lax
from jax.experimental import pallas as pl
from jax.experimental.pallas import tpu as pltpu


def _round_up(x, m):
    return ((x + m - 1) // m) * m


def _bert_output_kernel(eps):
    def kernel(x_ref, w_ref, b_ref, res_ref, g_ref, beta_ref, o_ref):
        # dense on the MXU: [tm, I] @ [I, H], bf16 operands, f32 accumulation.
        y = jnp.dot(x_ref[...], w_ref[...], preferred_element_type=jnp.float32)
        # TODO(synk): dropout is identity (eval mode); training-mode RNG masking
        # (pltpu.prng_random_bits) is not implemented here.
        z = y + b_ref[...] + res_ref[...].astype(jnp.float32)
        # One-pass LayerNorm stats over the hidden axis: var = E[z^2] - E[z]^2.
        inv_h = 1.0 / z.shape[-1]
        mean = jnp.sum(z, axis=-1, keepdims=True) * inv_h
        msq = jnp.sum(z * z, axis=-1, keepdims=True) * inv_h
        var = jnp.maximum(msq - mean * mean, 0.0)
        inv = lax.rsqrt(var + eps)
        # Write the normalized result directly (no separate zc temporary).
        o_ref[...] = ((z - mean) * (inv * g_ref[...]) + beta_ref[...]).astype(o_ref.dtype)
    return kernel


def _vmem_limit_bytes():
    # ~3/4 of physical VMEM, capped at 96 MiB:
    #   v5e/v6e (128 MiB physical) -> 96 MiB, v7x (64 MiB physical) -> 48 MiB.
    try:
        cap = int(pltpu.get_tpu_info().vmem_capacity_bytes)
    except Exception:
        cap = 64 * 1024 * 1024  # conservative (v7x-sized) fallback
    return min(cap - cap // 4, 96 * 1024 * 1024)


def _pick_row_tile(n_rows, row_tile, sub):
    """Row tile: sublane-aligned, <= row_tile, and >= 2 grid steps when possible
    (v7x shards the 'parallel' axis across its 2 TensorCores)."""
    if n_rows <= row_tile:
        tm = n_rows  # full-extent block is always a legal block shape
        half = _round_up(pl.cdiv(n_rows, 2), sub)
        if n_rows > sub and half < n_rows:
            tm = half
        return tm
    return _round_up(row_tile, sub)


def bert_output(hidden_states, input_tensor, w, b, gamma, beta, eps=1e-12,
                row_tile=512, mxu_dtype=jnp.bfloat16,
                residual_dtype=jnp.bfloat16, out_dtype=None):
    """hidden_states: [B, S, I], input_tensor (residual): [B, S, H],
    w: [I, H] (transposed torch Linear weight), b/gamma/beta: [H].
    Returns [B, S, H].

    residual_dtype: dtype the residual is streamed through HBM in (None keeps
    its native dtype). out_dtype defaults to input_tensor.dtype; pass
    jnp.bfloat16 to also halve the output write stream when callers allow it.
    """
    B, S, I = hidden_states.shape
    H = input_tensor.shape[-1]
    N = B * S
    if out_dtype is None:
        out_dtype = input_tensor.dtype

    # MXU operands in bf16 (casts are no-ops if the producer already emits bf16).
    x2 = hidden_states.reshape(N, I)
    if x2.dtype != mxu_dtype:
        x2 = x2.astype(mxu_dtype)
    w2 = w if w.dtype == mxu_dtype else w.astype(mxu_dtype)
    r2 = input_tensor.reshape(N, H)
    if residual_dtype is not None and r2.dtype != residual_dtype:
        r2 = r2.astype(residual_dtype)
    b2 = b.astype(jnp.float32).reshape(1, H)
    g2 = gamma.astype(jnp.float32).reshape(1, H)
    be2 = beta.astype(jnp.float32).reshape(1, H)

    sub = 16 if x2.dtype == jnp.bfloat16 else 8  # sublane packing multiple
    tm = _pick_row_tile(N, int(row_tile), sub)
    # Ragged tail block handled by Pallas (masked OOB writes) -> no pad/slice.
    grid = (pl.cdiv(N, tm),)

    def call(single_buffer_resident):
        res_kw = {"pipeline_mode": pl.Buffered(1)} if single_buffer_resident else {}
        return pl.pallas_call(
            _bert_output_kernel(float(eps)),
            out_shape=jax.ShapeDtypeStruct((N, H), out_dtype),
            grid_spec=pltpu.PrefetchScalarGridSpec(
                num_scalar_prefetch=0,
                grid=grid,
                in_specs=[
                    pl.BlockSpec((tm, I), lambda i: (i, 0)),            # x rows (bf16)
                    pl.BlockSpec((I, H), lambda i: (0, 0), **res_kw),   # weight, resident
                    pl.BlockSpec((1, H), lambda i: (0, 0), **res_kw),   # bias (f32)
                    pl.BlockSpec((tm, H), lambda i: (i, 0)),            # residual rows
                    pl.BlockSpec((1, H), lambda i: (0, 0), **res_kw),   # LN gamma (f32)
                    pl.BlockSpec((1, H), lambda i: (0, 0), **res_kw),   # LN beta (f32)
                ],
                out_specs=pl.BlockSpec((tm, H), lambda i: (i, 0)),
            ),
            compiler_params=pltpu.CompilerParams(
                dimension_semantics=("parallel",),
                vmem_limit_bytes=_vmem_limit_bytes(),
            ),
        )(x2, w2, b2, r2, g2, be2)

    try:
        out2 = call(True)
    except Exception:
        # Older Pallas builds may reject pipeline_mode on pallas_call BlockSpecs;
        # fall back to default double-buffering (correctness identical).
        out2 = call(False)

    return out2.reshape(B, S, H)


def _reference(hidden_states, input_tensor, w, b, gamma, beta, eps=1e-12):
    y = hidden_states @ w + b
    z = y + input_tensor
    mean = jnp.mean(z, axis=-1, keepdims=True)
    var = jnp.mean((z - mean) ** 2, axis=-1, keepdims=True)
    return (z - mean) * lax.rsqrt(var + eps) * gamma + beta


if __name__ == "__main__":
    # small BERT-like config
    batch, seq = 2, 8
    hidden_size = 32
    intermediate_size = 64
    eps = 1e-12

    key = jax.random.PRNGKey(0)
    k1, k2, k3, k4, k5, k6 = jax.random.split(key, 6)

    hidden_states = jax.random.normal(k1, (batch, seq, intermediate_size), jnp.float32)
    input_tensor = jax.random.normal(k2, (batch, seq, hidden_size), jnp.float32)

    # torch Linear(intermediate_size, hidden_size) stores weight as [H, I];
    # here we keep the transposed [I, H] layout.
    w = jax.random.normal(k3, (intermediate_size, hidden_size), jnp.float32) * 0.02
    b = jax.random.normal(k4, (hidden_size,), jnp.float32) * 0.02
    gamma = 1.0 + 0.1 * jax.random.normal(k5, (hidden_size,), jnp.float32)
    beta = 0.1 * jax.random.normal(k6, (hidden_size,), jnp.float32)

    out = bert_output(hidden_states, input_tensor, w, b, gamma, beta, eps=eps)
    out = jax.block_until_ready(out)

    # Reference with the same bf16 rounding applied to the streamed operands
    # (matmul inputs and residual); accumulation / LayerNorm stay f32.
    rnd = lambda a: a.astype(jnp.bfloat16).astype(jnp.float32)
    ref = _reference(rnd(hidden_states), rnd(input_tensor), rnd(w), b, gamma, beta, eps=eps)

    assert out.shape == (batch, seq, hidden_size)
    assert out.dtype == input_tensor.dtype
    assert jnp.allclose(out.astype(jnp.float32), ref, atol=2e-2, rtol=2e-2), \
        "mismatch vs reference"

    print("KERNEL_OK")
</pallas_src>

<mosaic_0001>
module attributes {stable_mosaic.version = 11 : i64} {
  func.func @kernel(%arg0: i32, %arg1: memref<16x64xbf16, #tpu.memory_space<vmem>>, %arg2: memref<64x32xbf16, #tpu.memory_space<vmem>>, %arg3: memref<1x32xf32, #tpu.memory_space<vmem>>, %arg4: memref<16x32xbf16, #tpu.memory_space<vmem>>, %arg5: memref<1x32xf32, #tpu.memory_space<vmem>>, %arg6: memref<1x32xf32, #tpu.memory_space<vmem>>, %arg7: memref<16x32xf32, #tpu.memory_space<vmem>>) attributes {dimension_semantics = [#tpu.dimension_semantics<parallel>], iteration_bounds = array<i64: 1>, scalar_prefetch = 0 : i64, scratch_operands = 0 : i64, tpu.core_type = #tpu.core_type<tc>, window_params = [{transform_indices = @transform_0, window_bounds = array<i64: 16, 64>}, {pipeline_mode = #tpu.pipeline_mode<synchronous>, transform_indices = @transform_1, window_bounds = array<i64: 64, 32>}, {pipeline_mode = #tpu.pipeline_mode<synchronous>, transform_indices = @transform_2, window_bounds = array<i64: 1, 32>}, {transform_indices = @transform_3, window_bounds = array<i64: 16, 32>}, {pipeline_mode = #tpu.pipeline_mode<synchronous>, transform_indices = @transform_4, window_bounds = array<i64: 1, 32>}, {pipeline_mode = #tpu.pipeline_mode<synchronous>, transform_indices = @transform_5, window_bounds = array<i64: 1, 32>}, {transform_indices = @transform_6, window_bounds = array<i64: 16, 32>}]} {
    %c0 = arith.constant 0 : index
    %c0_0 = arith.constant 0 : index
    %0 = vector.load %arg1[%c0, %c0_0] : memref<16x64xbf16, #tpu.memory_space<vmem>>, vector<16x64xbf16>
    %c0_1 = arith.constant 0 : index
    %c0_2 = arith.constant 0 : index
    %1 = vector.load %arg2[%c0_1, %c0_2] : memref<64x32xbf16, #tpu.memory_space<vmem>>, vector<64x32xbf16>
    %cst = arith.constant dense<0.000000e+00> : vector<16x32xf32>
    %2 = tpu.matmul %0, %1, %cst {dimension_numbers = #tpu.dot_dimension_numbers<[1], [0], [0], [1], [0, 0, 1, 1], [], []>} : vector<16x64xbf16>, vector<64x32xbf16>, vector<16x32xf32> -> vector<16x32xf32>
    %c0_3 = arith.constant 0 : index
    %c0_4 = arith.constant 0 : index
    %3 = vector.load %arg3[%c0_3, %c0_4] : memref<1x32xf32, #tpu.memory_space<vmem>>, vector<1x32xf32>
    %4 = vector.broadcast %3 : vector<1x32xf32> to vector<16x32xf32>
    %5 = arith.addf %2, %4 : vector<16x32xf32>
    %c0_5 = arith.constant 0 : index
    %c0_6 = arith.constant 0 : index
    %6 = vector.load %arg4[%c0_5, %c0_6] : memref<16x32xbf16, #tpu.memory_space<vmem>>, vector<16x32xbf16>
    %7 = arith.extf %6 : vector<16x32xbf16> to vector<16x32xf32>
    %8 = arith.addf %5, %7 : vector<16x32xf32>
    %cst_7 = arith.constant dense<0.000000e+00> : vector<16xf32>
    %9 = vector.multi_reduction <add>, %8, %cst_7 [1] : vector<16x32xf32> to vector<16xf32>
    %10 = vector.shape_cast %9 : vector<16xf32> to vector<16x1xf32>
    %cst_8 = arith.constant 3.125000e-02 : f32
    %11 = vector.broadcast %cst_8 : f32 to vector<16x1xf32>
    %12 = arith.mulf %10, %11 : vector<16x1xf32>
    %13 = arith.mulf %8, %8 : vector<16x32xf32>
    %cst_9 = arith.constant dense<0.000000e+00> : vector<16xf32>
    %14 = vector.multi_reduction <add>, %13, %cst_9 [1] : vector<16x32xf32> to vector<16xf32>
    %15 = vector.shape_cast %14 : vector<16xf32> to vector<16x1xf32>
    %cst_10 = arith.constant 3.125000e-02 : f32
    %16 = vector.broadcast %cst_10 : f32 to vector<16x1xf32>
    %17 = arith.mulf %15, %16 : vector<16x1xf32>
    %18 = arith.mulf %12, %12 : vector<16x1xf32>
    %19 = arith.subf %17, %18 : vector<16x1xf32>
    %cst_11 = arith.constant 0.000000e+00 : f32
    %20 = vector.broadcast %cst_11 : f32 to vector<16x1xf32>
    %21 = arith.maximumf %19, %20 : vector<16x1xf32>
    %cst_12 = arith.constant 9.99999996E-13 : f32
    %22 = vector.broadcast %cst_12 : f32 to vector<16x1xf32>
    %23 = arith.addf %21, %22 : vector<16x1xf32>
    %24 = math.rsqrt %23 : vector<16x1xf32>
    %25 = vector.broadcast %12 : vector<16x1xf32> to vector<16x32xf32>
    %26 = arith.subf %8, %25 : vector<16x32xf32>
    %c0_13 = arith.constant 0 : index
    %c0_14 = arith.constant 0 : index
    %27 = vector.load %arg5[%c0_13, %c0_14] : memref<1x32xf32, #tpu.memory_space<vmem>>, vector<1x32xf32>
    %28 = vector.broadcast %24 : vector<16x1xf32> to vector<16x32xf32>
    %29 = vector.broadcast %27 : vector<1x32xf32> to vector<16x32xf32>
    %30 = arith.mulf %28, %29 : vector<16x32xf32>
    %31 = arith.mulf %26, %30 : vector<16x32xf32>
    %c0_15 = arith.constant 0 : index
    %c0_16 = arith.constant 0 : index
    %32 = vector.load %arg6[%c0_15, %c0_16] : memref<1x32xf32, #tpu.memory_space<vmem>>, vector<1x32xf32>
    %33 = vector.broadcast %32 : vector<1x32xf32> to vector<16x32xf32>
    %34 = arith.addf %31, %33 : vector<16x32xf32>
    %c0_17 = arith.constant 0 : index
    %c0_18 = arith.constant 0 : index
    %35 = vector.load %arg7[%c0_17, %c0_18] : memref<16x32xf32, #tpu.memory_space<vmem>>, vector<16x32xf32>
    tpu.vector_store %arg7[%c0_17, %c0_18], %34 {strides = array<i32>} : memref<16x32xf32, #tpu.memory_space<vmem>>, vector<16x32xf32>,
    return
  }
  func.func @transform_0(%arg0: i32) -> (i32, i32) {
    %c0_i32 = arith.constant 0 : i32
    %c0_i32_0 = arith.constant 0 : i32
    return %arg0, %c0_i32 : i32, i32
  }
  func.func @transform_1(%arg0: i32) -> (i32, i32) {
    %c0_i32 = arith.constant 0 : i32
    %c0_i32_0 = arith.constant 0 : i32
    %c0_i32_1 = arith.constant 0 : i32
    return %c0_i32, %c0_i32_0 : i32, i32
  }
  func.func @transform_2(%arg0: i32) -> (i32, i32) {
    %c0_i32 = arith.constant 0 : i32
    %c0_i32_0 = arith.constant 0 : i32
    %c0_i32_1 = arith.constant 0 : i32
    return %c0_i32, %c0_i32_0 : i32, i32
  }
  func.func @transform_3(%arg0: i32) -> (i32, i32) {
    %c0_i32 = arith.constant 0 : i32
    %c0_i32_0 = arith.constant 0 : i32
    return %arg0, %c0_i32 : i32, i32
  }
  func.func @transform_4(%arg0: i32) -> (i32, i32) {
    %c0_i32 = arith.constant 0 : i32
    %c0_i32_0 = arith.constant 0 : i32
    %c0_i32_1 = arith.constant 0 : i32
    return %c0_i32, %c0_i32_0 : i32, i32
  }
  func.func @transform_5(%arg0: i32) -> (i32, i32) {
    %c0_i32 = arith.constant 0 : i32
    %c0_i32_0 = arith.constant 0 : i32
    %c0_i32_1 = arith.constant 0 : i32
    return %c0_i32, %c0_i32_0 : i32, i32
  }
  func.func @transform_6(%arg0: i32) -> (i32, i32) {
    %c0_i32 = arith.constant 0 : i32
    %c0_i32_0 = arith.constant 0 : i32
    return %arg0, %c0_i32 : i32, i32
  }
}

module attributes {stable_mosaic.version = 11 : i64} {
  func.func @kernel(%arg0: i32, %arg1: memref<16x64xbf16, #tpu.memory_space<vmem>>, %arg2: memref<64x32xbf16, #tpu.memory_space<vmem>>, %arg3: memref<1x32xf32, #tpu.memory_space<vmem>>, %arg4: memref<16x32xbf16, #tpu.memory_space<vmem>>, %arg5: memref<1x32xf32, #tpu.memory_space<vmem>>, %arg6: memref<1x32xf32, #tpu.memory_space<vmem>>, %arg7: memref<16x32xf32, #tpu.memory_space<vmem>>) attributes {dimension_semantics = [#tpu.dimension_semantics<parallel>], iteration_bounds = array<i64: 1>, scalar_prefetch = 0 : i64, scratch_operands = 0 : i64, tpu.core_type = #tpu.core_type<tc>, window_params = [{transform_indices = @transform_0, window_bounds = array<i64: 16, 64>}, {pipeline_mode = #tpu.pipeline_mode<synchronous>, transform_indices = @transform_1, window_bounds = array<i64: 64, 32>}, {pipeline_mode = #tpu.pipeline_mode<synchronous>, transform_indices = @transform_2, window_bounds = array<i64: 1, 32>}, {transform_indices = @transform_3, window_bounds = array<i64: 16, 32>}, {pipeline_mode = #tpu.pipeline_mode<synchronous>, transform_indices = @transform_4, window_bounds = array<i64: 1, 32>}, {pipeline_mode = #tpu.pipeline_mode<synchronous>, transform_indices = @transform_5, window_bounds = array<i64: 1, 32>}, {transform_indices = @transform_6, window_bounds = array<i64: 16, 32>}]} {
    %c0 = arith.constant 0 : index
    %c0_0 = arith.constant 0 : index
    %0 = vector.load %arg1[%c0, %c0_0] : memref<16x64xbf16, #tpu.memory_space<vmem>>, vector<16x64xbf16>
    %c0_1 = arith.constant 0 : index
    %c0_2 = arith.constant 0 : index
    %1 = vector.load %arg2[%c0_1, %c0_2] : memref<64x32xbf16, #tpu.memory_space<vmem>>, vector<64x32xbf16>
    %cst = arith.constant dense<0.000000e+00> : vector<16x32xf32>
    %2 = tpu.matmul %0, %1, %cst {dimension_numbers = #tpu.dot_dimension_numbers<[1], [0], [0], [1], [0, 0, 1, 1], [], []>} : vector<16x64xbf16>, vector<64x32xbf16>, vector<16x32xf32> -> vector<16x32xf32>
    %c0_3 = arith.constant 0 : index
    %c0_4 = arith.constant 0 : index
    %3 = vector.load %arg3[%c0_3, %c0_4] : memref<1x32xf32, #tpu.memory_space<vmem>>, vector<1x32xf32>
    %4 = vector.broadcast %3 : vector<1x32xf32> to vector<16x32xf32>
    %5 = arith.addf %2, %4 : vector<16x32xf32>
    %c0_5 = arith.constant 0 : index
    %c0_6 = arith.constant 0 : index
    %6 = vector.load %arg4[%c0_5, %c0_6] : memref<16x32xbf16, #tpu.memory_space<vmem>>, vector<16x32xbf16>
    %7 = arith.extf %6 : vector<16x32xbf16> to vector<16x32xf32>
    %8 = arith.addf %5, %7 : vector<16x32xf32>
    %cst_7 = arith.constant dense<0.000000e+00> : vector<16xf32>
    %9 = vector.multi_reduction <add>, %8, %cst_7 [1] : vector<16x32xf32> to vector<16xf32>
    %10 = vector.shape_cast %9 : vector<16xf32> to vector<16x1xf32>
    %cst_8 = arith.constant 3.125000e-02 : f32
    %11 = vector.broadcast %cst_8 : f32 to vector<16x1xf32>
    %12 = arith.mulf %10, %11 : vector<16x1xf32>
    %13 = arith.mulf %8, %8 : vector<16x32xf32>
    %cst_9 = arith.constant dense<0.000000e+00> : vector<16xf32>
    %14 = vector.multi_reduction <add>, %13, %cst_9 [1] : vector<16x32xf32> to vector<16xf32>
    %15 = vector.shape_cast %14 : vector<16xf32> to vector<16x1xf32>
    %cst_10 = arith.constant 3.125000e-02 : f32
    %16 = vector.broadcast %cst_10 : f32 to vector<16x1xf32>
    %17 = arith.mulf %15, %16 : vector<16x1xf32>
    %18 = arith.mulf %12, %12 : vector<16x1xf32>
    %19 = arith.subf %17, %18 : vector<16x1xf32>
    %cst_11 = arith.constant 0.000000e+00 : f32
    %20 = vector.broadcast %cst_11 : f32 to vector<16x1xf32>
    %21 = arith.maximumf %19, %20 : vector<16x1xf32>
    %cst_12 = arith.constant 9.99999996E-13 : f32
    %22 = vector.broadcast %cst_12 : f32 to vector<16x1xf32>
    %23 = arith.addf %21, %22 : vector<16x1xf32>
    %24 = math.rsqrt %23 : vector<16x1xf32>
    %25 = vector.broadcast %12 : vector<16x1xf32> to vector<16x32xf32>
    %26 = arith.subf %8, %25 : vector<16x32xf32>
    %c0_13 = arith.constant 0 : index
    %c0_14 = arith.constant 0 : index
    %27 = vector.load %arg5[%c0_13, %c0_14] : memref<1x32xf32, #tpu.memory_space<vmem>>, vector<1x32xf32>
    %28 = vector.broadcast %24 : vector<16x1xf32> to vector<16x32xf32>
    %29 = vector.broadcast %27 : vector<1x32xf32> to vector<16x32xf32>
    %30 = arith.mulf %28, %29 : vector<16x32xf32>
    %31 = arith.mulf %26, %30 : vector<16x32xf32>
    %c0_15 = arith.constant 0 : index
    %c0_16 = arith.constant 0 : index
    %32 = vector.load %arg6[%c0_15, %c0_16] : memref<1x32xf32, #tpu.memory_space<vmem>>, vector<1x32xf32>
    %33 = vector.broadcast %32 : vector<1x32xf32> to vector<16x32xf32>
    %34 = arith.addf %31, %33 : vector<16x32xf32>
    %c0_17 = arith.constant 0 : index
    %c0_18 = arith.constant 0 : index
    %35 = vector.load %arg7[%c0_17, %c0_18] : memref<16x32xf32, #tpu.memory_space<vmem>>, vector<16x32xf32>
    tpu.vector_store %arg7[%c0_17, %c0_18], %34 {strides = array<i32>} : memref<16x32xf32, #tpu.memory_space<vmem>>, vector<16x32xf32>,
    return
  }
  func.func @transform_0(%arg0: i32) -> (i32, i32) {
    %c0_i32 = arith.constant 0 : i32
    %c0_i32_0 = arith.constant 0 : i32
    return %arg0, %c0_i32 : i32, i32
  }
  func.func @transform_1(%arg0: i32) -> (i32, i32) {
    %c0_i32 = arith.constant 0 : i32
    %c0_i32_0 = arith.constant 0 : i32
    %c0_i32_1 = arith.constant 0 : i32
    return %c0_i32, %c0_i32_0 : i32, i32
  }
  func.func @transform_2(%arg0: i32) -> (i32, i32) {
    %c0_i32 = arith.constant 0 : i32
    %c0_i32_0 = arith.constant 0 : i32
    %c0_i32_1 = arith.constant 0 : i32
    return %c0_i32, %c0_i32_0 : i32, i32
  }
  func.func @transform_3(%arg0: i32) -> (i32, i32) {
    %c0_i32 = arith.constant 0 : i32
    %c0_i32_0 = arith.constant 0 : i32
    return %arg0, %c0_i32 : i32, i32
  }
  func.func @transform_4(%arg0: i32) -> (i32, i32) {
    %c0_i32 = arith.constant 0 : i32
    %c0_i32_0 = arith.constant 0 : i32
    %c0_i32_1 = arith.constant 0 : i32
    return %c0_i32, %c0_i32_0 : i32, i32
  }
  func.func @transform_5(%arg0: i32) -> (i32, i32) {
    %c0_i32 = arith.constant 0 : i32
    %c0_i32_0 = arith.constant 0 : i32
    %c0_i32_1 = arith.constant 0 : i32
    return %c0_i32, %c0_i32_0 : i32, i32
  }
  func.func @transform_6(%arg0: i32) -> (i32, i32) {
    %c0_i32 = arith.constant 0 : i32
    %c0_i32_0 = arith.constant 0 : i32
    return %arg0, %c0_i32 : i32, i32
  }
}

</mosaic_0001>

<bundles_post_ra>
// kernel: tpu_custom_call.1
= control target key start
LH: loop header
LB: loop body
LE: loop exit
PB: predicated region body
PF: predicated region fallthrough
CT: control target
= control target key end

     0   :  { %v257_v1 = vmov 0.0   ;;  %vm258_vm0 = vmmov 0   ;;  %s333_s0 = inlined_call_operand.vmem [shape: bf16[16,64], index: 0, kind: input, shape index: {}]   ;;  %s334_s1 = inlined_call_operand.vmem [shape: bf16[64,32], index: 1, kind: input, shape index: {}]   ;;  %s335_s2 = inlined_call_operand.vmem [shape: f32[1,32], index: 2, kind: input, shape index: {}]   ;;  %s336_s3 = inlined_call_operand.vmem [shape: bf16[16,32], index: 3, kind: input, shape index: {}]   ;;  %s337_s4 = inlined_call_operand.vmem [shape: f32[1,32], index: 4, kind: input, shape index: {}]   ;;  %s338_s5 = inlined_call_operand.vmem [shape: f32[1,32], index: 5, kind: input, shape index: {}]   ;;  %s339_s6 = inlined_call_operand.hbm [shape: f32[16,32], index: 6, kind: output, shape index: {}]  }
   0x1   :  { %v226_v0 = vld [vmem:[%s334_s1 + $0x18] sm:$0xff]   ;;  %209 = vmatprep.subr.bf16.mxu0 %v257_v1  ;;  %v227_v2 = vld [vmem:[%s334_s1 + $0x10] sm:$0xff]   ;;  %217 = vmatprep.mubr.msk.bf16.mxu0 %vm258_vm0, %v257_v1 }
   0x2   :  { %210 = vmatpush3.bf16.msra.mxu0 %v226_v0 }
   0x3   :  { %211 = vmatprep.subr.bf16.mxu0 %v257_v1 }
   0x4   :  { %11 = vsyncpa [#allocation3], 0  ;;  %v228_v3 = vld [vmem:[%s334_s1 + $0x8] sm:$0xff]   ;;  %v229_v4 = vld [vmem:[%s334_s1] sm:$0xff]   ;;  %vm71_vm1 = vcmask 523264   ;;  %vm122_vm2 = vcmask 261120  }
   0x5   :  { %v230_v5 = vld [vmem:[%s333_s0] sm:$0xff]   ;;  %s259_s11 = smov [#allocation2]  }
   0x6   :  { %212 = vmatpush3.bf16.msra.mxu0 %v227_v2  ;;  %v201_v6 = vld [vmem:[%s336_s3] sm:$0xff]   ;;  %s180_s12 = sshll.u32 %s259_s11, 4  ;;  %s181_s12 = int_to_ptr.vmem [resolvable:$true] %s180_s12 }
   0x7   :  { %213 = vmatprep.subr.bf16.mxu0 %v257_v1  ;;  %v191_v7 = vld [vmem:[%s335_s2] ss:$0 sm:$0xff]  ;;  %v202_v8 = vunpack.c.l.bf16 %v201_v6  ;;  %v203_v13 = vunpack.c.h.bf16 %v201_v6  ;;  %p240_p1 = scmp.lt.s32.totalorder %s181_s12, %s181_s12 }
   0x8   :  { %v198_v40 = vld [vmem:[%s337_s4] ss:$0 sm:$0xff]  ;;  %s235_s4 = scalar_lea.vmem %s181_s12, 256 }
   0x9   :  { %v199_v44 = vld [vmem:[%s338_s5] ss:$0 sm:$0xff]  ;;  %p236_p0 = scmp.ne.s32.totalorder %s181_s12, %s235_s4  ;;  %p241_p2 = scmp.lt.s32.totalorder %s235_s4, %s235_s4 }
   0xa   :  { %214 = vmatpush3.bf16.msra.mxu0 %v228_v3 }
   0xb   :  { %215 = vmatprep.subr.bf16.mxu0 %v257_v1  ;;  %p242_p3 = por %p241_p2, %p240_p1 }
   0xd   :  { %p243_p4 = pnand %p242_p3, %p236_p0 }
   0xe   :  { %216 = vmatpush3.bf16.msra.mxu0 %v229_v4 }
  0x11   :  { %218 = vmatmul.mubr.msk.bf16.vlgmr.msra.gmra.mxu0 %vm71_vm1, %v230_v5 }
  0xd1   :  { %v109_v9 = vpop.f32.mrf.mxu0 }
  0xd2   :  { %v110_v10 = vadd.f32 %v191_v7, %v109_v9 }
  0xd3   :  { %v219_v11 = vpop.f32.mrf.mxu0 }
  0xd4   :  { %v120_v12 = vadd.f32 %v202_v8, %v110_v10 }
  0xd5   :  { %v112_v14 = vpop.f32.mrf.mxu0 }
  0xd6   :  { %v113_v15 = vadd.f32 %v191_v7, %v112_v14  ;;  %v123_v16 = vsel %vm122_vm2, %v120_v12, 0.0  ;;  %v131_v17 = vmul.f32 %v120_v12, %v120_v12 }
  0xd7   :  { %124 = vadd.xlane.f32.xlu0 %v123_v16  ;;  %v220_v18 = vpop.f32.mrf.mxu0 }
  0xd8   :  { %v121_v19 = vadd.f32 %v203_v13, %v113_v15  ;;  %v133_v20 = vsel %vm122_vm2, %v131_v17, 0.0 }
  0xd9   :  { %134 = vadd.xlane.f32.xlu1 %v133_v20 }
  0xda   :  { %v126_v21 = vsel %vm122_vm2, %v121_v19, 0.0  ;;  %v132_v22 = vmul.f32 %v121_v19, %v121_v19 }
  0xdb   :  { %127 = vadd.xlane.f32.xlu0 %v126_v21 }
  0xdc   :  { %v136_v23 = vsel %vm122_vm2, %v132_v22, 0.0 }
  0xdd   :  { %137 = vadd.xlane.f32.xlu1 %v136_v23 }
 0x160   :  { %v125_v24 = vpop.xlane.xlu0 %124 }
 0x161   :  { %v129_v25 = vmul.f32 0.03125, %v125_v24 }
 0x162   :  { %v135_v26 = vpop.xlane.xlu1 %134 }
 0x163   :  { %v141_v27 = vmul.f32 %v129_v25, %v129_v25  ;;  %v139_v28 = vmul.f32 0.03125, %v135_v26  ;;  %v151_v42 = vsub.f32 %v120_v12, %v129_v25 }
 0x164   :  { %v128_v29 = vpop.xlane.xlu0 %127 }
 0x165   :  { %v143_v30 = vsub.f32 %v139_v28, %v141_v27  ;;  %v130_v31 = vmul.f32 0.03125, %v128_v29 }
 0x166   :  { %v138_v32 = vpop.xlane.xlu1 %137 }
 0x167   :  { %v145_v33 = vmax.f32 %v143_v30, 0.0  ;;  %v142_v34 = vmul.f32 %v130_v31, %v130_v31  ;;  %v140_v35 = vmul.f32 0.03125, %v138_v32  ;;  %v152_v47 = vsub.f32 %v121_v19, %v130_v31 }
 0x169   :  { %v147_v36 = vadd.f32 1e-12, %v145_v33  ;;  %v144_v37 = vsub.f32 %v140_v35, %v142_v34 }
 0x16b   :  { %231 = vrsqrt.f32 %v147_v36  ;;  %v146_v38 = vmax.f32 %v144_v37, 0.0 }
 0x16d   :  { %v148_v39 = vadd.f32 1e-12, %v146_v38 }
 0x16f   :  { %233 = vrsqrt.f32 %v148_v39 }
 0x178   :  { %v232_v41 = vpop.eup %231 }
 0x179   :  { %v160_v43 = vmul.f32 %v232_v41, %v198_v40 }
 0x17b   :  { %v162_v45 = vmul.f32 %v160_v43, %v151_v42 }
 0x17c   :  { %v234_v46 = vpop.eup %233 }
 0x17d   :  { %v161_v48 = vmul.f32 %v234_v46, %v198_v40  ;;  %v171_v49 = vadd.f32 %v199_v44, %v162_v45 }
 0x17f   :  { %v163_v50 = vmul.f32 %v161_v48, %v152_v47  ;;  %173 = vst.msk [vmem:[#allocation2] sm:$0xff] %vm122_vm2, %v171_v49 }
 0x181   :  { %v172_v51 = vadd.f32 %v199_v44, %v163_v50 }
 0x183   :  { %174 = vst.msk [vmem:[#allocation2 + $0x8] sm:$0xff] %vm122_vm2, %v172_v51 }
 0x184   :  { %246 = shalt.err (!%p243_p4)
}
 0x185   :  { %s260_s5 = smov 128   ;;  %s261_s13 = smov 8  }
 0x186   :  { %186 = dma.vmem_to_hbm [thread:$0]  %s181_s12, 256, %s339_s6, [#allocation3], %s260_s5, %s260_s5, %s261_s13  }
 0x187   :  { %255 = dma.done.wait [#allocation3], 256  }
 0x188   :  { %256 = vsyncadd [#allocation3], 4294967040 }
 0x189   :  { %190 = vsyncpa [#allocation3], 1 }

// kernel: tpu_custom_call.1
= control target key start
LH: loop header
LB: loop body
LE: loop exit
PB: predicated region body
PF: predicated region fallthrough
CT: control target
= control target key end

     0   :  { %v257_v1 = vmov 0.0   ;;  %vm258_vm0 = vmmov 0   ;;  %s333_s0 = inlined_call_operand.vmem [shape: bf16[16,64], index: 0, kind: input, shape index: {}]   ;;  %s334_s1 = inlined_call_operand.vmem [shape: bf16[64,32], index: 1, kind: input, shape index: {}]   ;;  %s335_s2 = inlined_call_operand.vmem [shape: f32[1,32], index: 2, kind: input, shape index: {}]   ;;  %s336_s3 = inlined_call_operand.vmem [shape: bf16[16,32], index: 3, kind: input, shape index: {}]   ;;  %s337_s4 = inlined_call_operand.vmem [shape: f32[1,32], index: 4, kind: input, shape index: {}]   ;;  %s338_s5 = inlined_call_operand.vmem [shape: f32[1,32], index: 5, kind: input, shape index: {}]   ;;  %s339_s6 = inlined_call_operand.hbm [shape: f32[16,32], index: 6, kind: output, shape index: {}]  }
   0x1   :  { %v226_v0 = vld [vmem:[%s334_s1 + $0x18] sm:$0xff]   ;;  %209 = vmatprep.subr.bf16.mxu0 %v257_v1  ;;  %v227_v2 = vld [vmem:[%s334_s1 + $0x10] sm:$0xff]   ;;  %217 = vmatprep.mubr.msk.bf16.mxu0 %vm258_vm0, %v257_v1 }
   0x2   :  { %210 = vmatpush3.bf16.msra.mxu0 %v226_v0 }
   0x3   :  { %211 = vmatprep.subr.bf16.mxu0 %v257_v1 }
   0x4   :  { %11 = vsyncpa [#allocation3], 0  ;;  %v228_v3 = vld [vmem:[%s334_s1 + $0x8] sm:$0xff]   ;;  %v229_v4 = vld [vmem:[%s334_s1] sm:$0xff]   ;;  %vm71_vm1 = vcmask 523264   ;;  %vm122_vm2 = vcmask 261120  }
   0x5   :  { %v230_v5 = vld [vmem:[%s333_s0] sm:$0xff]   ;;  %s259_s11 = smov [#allocation2]  }
   0x6   :  { %212 = vmatpush3.bf16.msra.mxu0 %v227_v2  ;;  %v201_v6 = vld [vmem:[%s336_s3] sm:$0xff]   ;;  %s180_s12 = sshll.u32 %s259_s11, 4  ;;  %s181_s12 = int_to_ptr.vmem [resolvable:$true] %s180_s12 }
   0x7   :  { %213 = vmatprep.subr.bf16.mxu0 %v257_v1  ;;  %v191_v7 = vld [vmem:[%s335_s2] ss:$0 sm:$0xff]  ;;  %v202_v8 = vunpack.c.l.bf16 %v201_v6  ;;  %v203_v13 = vunpack.c.h.bf16 %v201_v6  ;;  %p240_p1 = scmp.lt.s32.totalorder %s181_s12, %s181_s12 }
   0x8   :  { %v198_v40 = vld [vmem:[%s337_s4] ss:$0 sm:$0xff]  ;;  %s235_s4 = scalar_lea.vmem %s181_s12, 256 }
   0x9   :  { %v199_v44 = vld [vmem:[%s338_s5] ss:$0 sm:$0xff]  ;;  %p236_p0 = scmp.ne.s32.totalorder %s181_s12, %s235_s4  ;;  %p241_p2 = scmp.lt.s32.totalorder %s235_s4, %s235_s4 }
   0xa   :  { %214 = vmatpush3.bf16.msra.mxu0 %v228_v3 }
   0xb   :  { %215 = vmatprep.subr.bf16.mxu0 %v257_v1  ;;  %p242_p3 = por %p241_p2, %p240_p1 }
   0xd   :  { %p243_p4 = pnand %p242_p3, %p236_p0 }
   0xe   :  { %216 = vmatpush3.bf16.msra.mxu0 %v229_v4 }
  0x11   :  { %218 = vmatmul.mubr.msk.bf16.vlgmr.msra.gmra.mxu0 %vm71_vm1, %v230_v5 }
  0xd1   :  { %v109_v9 = vpop.f32.mrf.mxu0 }
  0xd2   :  { %v110_v10 = vadd.f32 %v191_v7, %v109_v9 }
  0xd3   :  { %v219_v11 = vpop.f32.mrf.mxu0 }
  0xd4   :  { %v120_v12 = vadd.f32 %v202_v8, %v110_v10 }
  0xd5   :  { %v112_v14 = vpop.f32.mrf.mxu0 }
  0xd6   :  { %v113_v15 = vadd.f32 %v191_v7, %v112_v14  ;;  %v123_v16 = vsel %vm122_vm2, %v120_v12, 0.0  ;;  %v131_v17 = vmul.f32 %v120_v12, %v120_v12 }
  0xd7   :  { %124 = vadd.xlane.f32.xlu0 %v123_v16  ;;  %v220_v18 = vpop.f32.mrf.mxu0 }
  0xd8   :  { %v121_v19 = vadd.f32 %v203_v13, %v113_v15  ;;  %v133_v20 = vsel %vm122_vm2, %v131_v17, 0.0 }
  0xd9   :  { %134 = vadd.xlane.f32.xlu1 %v133_v20 }
  0xda   :  { %v126_v21 = vsel %vm122_vm2, %v121_v19, 0.0  ;;  %v132_v22 = vmul.f32 %v121_v19, %v121_v19 }
  0xdb   :  { %127 = vadd.xlane.f32.xlu0 %v126_v21 }
  0xdc   :  { %v136_v23 = vsel %vm122_vm2, %v132_v22, 0.0 }
  0xdd   :  { %137 = vadd.xlane.f32.xlu1 %v136_v23 }
 0x160   :  { %v125_v24 = vpop.xlane.xlu0 %124 }
 0x161   :  { %v129_v25 = vmul.f32 0.03125, %v125_v24 }
 0x162   :  { %v135_v26 = vpop.xlane.xlu1 %134 }
 0x163   :  { %v141_v27 = vmul.f32 %v129_v25, %v129_v25  ;;  %v139_v28 = vmul.f32 0.03125, %v135_v26  ;;  %v151_v42 = vsub.f32 %v120_v12, %v129_v25 }
 0x164   :  { %v128_v29 = vpop.xlane.xlu0 %127 }
 0x165   :  { %v143_v30 = vsub.f32 %v139_v28, %v141_v27  ;;  %v130_v31 = vmul.f32 0.03125, %v128_v29 }
 0x166   :  { %v138_v32 = vpop.xlane.xlu1 %137 }
 0x167   :  { %v145_v33 = vmax.f32 %v143_v30, 0.0  ;;  %v142_v34 = vmul.f32 %v130_v31, %v130_v31  ;;  %v140_v35 = vmul.f32 0.03125, %v138_v32  ;;  %v152_v47 = vsub.f32 %v121_v19, %v130_v31 }
 0x169   :  { %v147_v36 = vadd.f32 1e-12, %v145_v33  ;;  %v144_v37 = vsub.f32 %v140_v35, %v142_v34 }
 0x16b   :  { %231 = vrsqrt.f32 %v147_v36  ;;  %v146_v38 = vmax.f32 %v144_v37, 0.0 }
 0x16d   :  { %v148_v39 = vadd.f32 1e-12, %v146_v38 }
 0x16f   :  { %233 = vrsqrt.f32 %v148_v39 }
 0x178   :  { %v232_v41 = vpop.eup %231 }
 0x179   :  { %v160_v43 = vmul.f32 %v232_v41, %v198_v40 }
 0x17b   :  { %v162_v45 = vmul.f32 %v160_v43, %v151_v42 }
 0x17c   :  { %v234_v46 = vpop.eup %233 }
 0x17d   :  { %v161_v48 = vmul.f32 %v234_v46, %v198_v40  ;;  %v171_v49 = vadd.f32 %v199_v44, %v162_v45 }
 0x17f   :  { %v163_v50 = vmul.f32 %v161_v48, %v152_v47  ;;  %173 = vst.msk [vmem:[#allocation2] sm:$0xff] %vm122_vm2, %v171_v49 }
 0x181   :  { %v172_v51 = vadd.f32 %v199_v44, %v163_v50 }
 0x183   :  { %174 = vst.msk [vmem:[#allocation2 + $0x8] sm:$0xff] %vm122_vm2, %v172_v51 }
 0x184   :  { %246 = shalt.err (!%p243_p4)
}
 0x185   :  { %s260_s5 = smov 128   ;;  %s261_s13 = smov 8  }
 0x186   :  { %186 = dma.vmem_to_hbm [thread:$0]  %s181_s12, 256, %s339_s6, [#allocation3], %s260_s5, %s260_s5, %s261_s13  }
 0x187   :  { %255 = dma.done.wait [#allocation3], 256  }
 0x188   :  { %256 = vsyncadd [#allocation3], 4294967040 }
 0x189   :  { %190 = vsyncpa [#allocation3], 1 }

</bundles_post_ra>
